<compile_context>
chip_gen: v5e
topology: v5e:2x2
jax: 0.10.0
libtpu: 0.0.40
codegen_flags: <defaults>
</compile_context>

<pallas_src>
import functools

import jax
import jax.numpy as jnp
from jax.experimental import pallas as pl
from jax.experimental.pallas import tpu as pltpu


# ------------------------------- Pallas kernel -------------------------------

def _audionet_fused_kernel(x_ref, wk_ref, b_ref, o_ref, acc_ref, *, tile_h, h_valid):
    """One (image, H-tile) grid step.

    x_ref  : (Hu, 3)    f32 VMEM  -- H-padded input image (Hu = n_tiles*tile_h + 8)
    wk_ref : (7, 3, C)  f32 VMEM  -- conv1 kernel with freq_conv1x1 folded in,
                                     width-pad columns already sliced away
    b_ref  : (1, 1)     f32 SMEM  -- freq_conv1x1 bias
    o_ref  : (1, C)     f32 VMEM  -- per-image output row
    acc_ref: (1, C)     f32 VMEM scratch -- running max over H tiles
    """
    t = pl.program_id(1)
    nt = pl.num_programs(1)

    @pl.when(t == 0)
    def _init():
        acc_ref[...] = jnp.full(acc_ref.shape, -jnp.inf, acc_ref.dtype)

    # One aligned slab load per tile (tile_h and the 8-row halo are multiples of 8).
    row0 = pl.multiple_of(t * tile_h, 8)
    slab = x_ref[pl.ds(row0, tile_h + 8), :]                  # (tile_h + 8, 3)

    # conv1 (+ folded freq conv): 7 vertical taps, each a (tile_h, 3) @ (3, C) MXU
    # dot accumulated in f32.  The taps are static slices of the in-register slab;
    # no im2col / patch tensor exists anywhere.
    y = jnp.dot(slab[0:tile_h, :], wk_ref[0], preferred_element_type=jnp.float32)
    for kh in range(1, 7):                                    # static unroll
        y = y + jnp.dot(slab[kh:kh + tile_h, :], wk_ref[kh],
                        preferred_element_type=jnp.float32)

    # Fold the tile into the running max.  Rows past the true image height exist
    # only in the last tile and their count is static, so the tail is handled with
    # a static row-slice on that tile only -- no per-tile iota/compare/select.
    r_tail = h_valid % tile_h
    if r_tail == 0:
        acc_ref[...] = jnp.maximum(acc_ref[...], jnp.max(y, axis=0, keepdims=True))
    else:
        is_last = t == nt - 1

        @pl.when(jnp.logical_not(is_last))
        def _full_tile():
            acc_ref[...] = jnp.maximum(acc_ref[...],
                                       jnp.max(y, axis=0, keepdims=True))

        @pl.when(is_last)
        def _tail_tile():
            acc_ref[...] = jnp.maximum(
                acc_ref[...], jnp.max(y[:r_tail, :], axis=0, keepdims=True))

    @pl.when(t == nt - 1)
    def _finalize():                                          # one C-wide store per image
        o_ref[...] = acc_ref[...] + b_ref[0, 0]


# ------------------------------- host wrappers --------------------------------

def _round_up(v, m):
    return (v + m - 1) // m * m


def prepare_audionet_params(conv1_w, freq_w, freq_b):
    """Fold freq_conv1x1 into conv1's 7x7 kernel and drop the all-zero width-pad taps.

    Hoisted out of the jitted forward so the fold/transpose is paid once per weight
    set, not per call.  Valid only while no backbone / nonlinearity sits between
    conv1 and freq_conv1x1 (see TODO at top).  Returns (wk (7, 3, C) f32, bias (1, 1)).
    """
    cout, cin, kh_sz, kw_sz = conv1_w.shape
    fw = freq_w.reshape(-1).astype(jnp.float32)
    assert cin == 1 and kh_sz == 7 and kw_sz == 7 and fw.shape[0] == 3
    w7 = conv1_w[:, 0, :, :].astype(jnp.float32)              # (C, 7, 7)
    # wfold[c, kh, col] = sum_w fw[w] * w7[c, kh, col - w]  over 9 padded columns
    wfold = jnp.zeros((cout, kh_sz, kw_sz + 2), jnp.float32)
    for i in range(3):
        wfold = wfold.at[:, :, i:i + kw_sz].add(fw[i] * w7)
    # Input width is 3 with conv pad 3, so padded columns 0-2 / 6-8 only ever
    # multiply zeros: keep the 3 columns that see real data.
    wk = jnp.transpose(wfold[:, :, 3:6], (1, 2, 0))           # (7, 3, C)
    bias = freq_b.reshape(1, 1).astype(jnp.float32)
    return wk, bias


def audionet_forward(x_nchw, wk, bias, *, tile_h=256):
    """AudioNet forward.  x_nchw: (N, 1, H, 3) f32 -> (N, C) f32."""
    n, cin, h, w = x_nchw.shape
    kh_sz, kw_in, cout = wk.shape
    assert cin == 1 and w == 3 and kh_sz == 7 and kw_in == 3

    # Keep tile_h <= 256: the f32 (tile_h, C) accumulator already spans ~16 vregs
    # at 256; larger tiles only add vreg pressure once per-step overhead amortizes.
    th = min(_round_up(h, 8), _round_up(min(tile_h, 256), 8))
    n_ht = pl.cdiv(h, th)
    hu = n_ht * th + 8                # 6-row halo rounded to 8 -> aligned slab loads

    # Zero-pad only along H (3 rows on top for the conv pad, rest at the bottom so
    # every tile's (tile_h + 8)-row slab stays in bounds).  No width padding.
    pad_top = kh_sz // 2
    xpad = jnp.pad(x_nchw[:, 0, :, :].astype(jnp.float32),
                   ((0, 0), (pad_top, hu - h - pad_top), (0, 0)))

    kernel = functools.partial(_audionet_fused_kernel, tile_h=th, h_valid=h)
    flops = 2 * n * n_ht * th * kh_sz * kw_in * cout
    bytes_accessed = 4 * (n * hu * kw_in + kh_sz * kw_in * cout + n * cout)

    # TODO(synk): for very long spectrograms (or N==1 on v7x) retile the input
    #             BlockSpec along H (halo-duplicated (n, n_ht, th+8, 3) layout) and
    #             split the H-tile axis across both v7x TensorCores with a
    #             (N, 2, C) partial-max output; whole-image residency is fine at
    #             12 B/row for typical audio lengths.
    out = pl.pallas_call(
        kernel,
        out_shape=jax.ShapeDtypeStruct((n, 1, cout), jnp.float32),
        grid_spec=pltpu.PrefetchScalarGridSpec(
            num_scalar_prefetch=0,
            grid=(n, n_ht),                               # reduction axis last
            in_specs=[
                # whole padded image per n (12 B/row); same block across H tiles so
                # it is DMA'd once per image and double-buffered across images.
                pl.BlockSpec((None, hu, kw_in), lambda b, t: (b, 0, 0)),
                pl.BlockSpec((kh_sz, kw_in, cout), lambda b, t: (0, 0, 0)),
                pl.BlockSpec(memory_space=pltpu.MemorySpace.SMEM),
            ],
            out_specs=pl.BlockSpec((None, 1, cout), lambda b, t: (b, 0, 0)),
            scratch_shapes=[pltpu.VMEM((1, cout), jnp.float32)],
        ),
        compiler_params=pltpu.CompilerParams(
            dimension_semantics=("parallel", "arbitrary"),
            # explicit scoped-VMEM budget: within v7x's 64 MiB physical, lifts
            # v5e's 16 MiB default for long inputs.
            vmem_limit_bytes=32 * 1024 * 1024),
        cost_estimate=pl.CostEstimate(flops=flops, transcendentals=0,
                                      bytes_accessed=bytes_accessed),
    )(xpad, wk, bias)
    return out.reshape(n, cout)


# ------------------------- pure-JAX reference (check) -------------------------

def _audionet_reference(x, conv1_w, freq_w, freq_b):
    feat = jax.lax.conv_general_dilated(
        x.astype(jnp.float32), conv1_w.astype(jnp.float32),
        window_strides=(1, 1), padding=((3, 3), (3, 3)),
        dimension_numbers=("NCHW", "OIHW", "NCHW"))               # (N, 64, H, 3)
    y = jnp.einsum("nchw,w->nch", feat, freq_w.reshape(-1)) + freq_b.reshape(())
    return jnp.max(y, axis=-1)                                    # (N, 64)


# ----------------------------------- main -------------------------------------

if __name__ == "__main__":
    key = jax.random.PRNGKey(0)
    k_x, k_c1, k_fw, k_fb, k_x2 = jax.random.split(key, 5)

    n, h, w = 2, 16, 3          # width must be 3: freq_conv1x1 has 3 input channels
    x = jax.random.normal(k_x, (n, 1, h, w), dtype=jnp.float32)

    # parameter init mirroring weights_init: conv weights ~ N(0, 0.02); freq_conv
    # bias keeps PyTorch's default U(-1/sqrt(fan_in), 1/sqrt(fan_in)).
    conv1_w = 0.02 * jax.random.normal(k_c1, (64, 1, 7, 7), dtype=jnp.float32)
    freq_w = 0.02 * jax.random.normal(k_fw, (1, 3, 1, 1), dtype=jnp.float32)
    freq_b = jax.random.uniform(k_fb, (1,), jnp.float32,
                                -1.0 / jnp.sqrt(3.0), 1.0 / jnp.sqrt(3.0))

    # weight fold is done once per weight set, outside the jitted per-call path.
    wk, bias = jax.block_until_ready(prepare_audionet_params(conv1_w, freq_w, freq_b))

    fwd = jax.jit(audionet_forward, static_argnames=("tile_h",))

    out = jax.block_until_ready(fwd(x, wk, bias))
    assert out.shape == (n, 64) and out.dtype == jnp.float32
    ref = _audionet_reference(x, conv1_w, freq_w, freq_b)
    assert jnp.allclose(out, ref, rtol=1e-3, atol=1e-4), \
        float(jnp.max(jnp.abs(out - ref)))

    # second shape: H not a multiple of the tile -> exercises the multi-tile
    # running-max reduction and the static tail-row slice on the last tile.
    h2 = 21
    x2 = jax.random.normal(k_x2, (n, 1, h2, w), dtype=jnp.float32)
    out2 = jax.block_until_ready(fwd(x2, wk, bias, tile_h=8))
    ref2 = _audionet_reference(x2, conv1_w, freq_w, freq_b)
    assert jnp.allclose(out2, ref2, rtol=1e-3, atol=1e-4)

    print("KERNEL_OK")
</pallas_src>

<mosaic_0001>
module attributes {stable_mosaic.version = 11 : i64} {
  func.func @_audionet_fused_kernel(%arg0: i32, %arg1: i32, %arg2: memref<1x24x3xf32, #tpu.memory_space<vmem>>, %arg3: memref<7x3x64xf32, #tpu.memory_space<vmem>>, %arg4: memref<1x1xf32, #tpu.memory_space<smem>>, %arg5: memref<1x1x64xf32, #tpu.memory_space<vmem>>, %arg6: memref<1x64xf32, #tpu.memory_space<vmem>>) attributes {dimension_semantics = [#tpu.dimension_semantics<parallel>, #tpu.dimension_semantics<arbitrary>], iteration_bounds = array<i64: 2, 1>, scalar_prefetch = 0 : i64, scratch_operands = 1 : i64, tpu.core_type = #tpu.core_type<tc>, window_params = [{transform_indices = @transform_0, window_bounds = array<i64: 1, 24, 3>}, {pipeline_mode = #tpu.pipeline_mode<synchronous>, transform_indices = @transform_1, window_bounds = array<i64: 7, 3, 64>}, {transform_indices = @transform_2, window_bounds = array<i64: 1, 1>}, {transform_indices = @transform_3, window_bounds = array<i64: 1, 1, 64>}]} {
    %c0_i32 = arith.constant 0 : i32
    %0 = arith.cmpi eq, %arg1, %c0_i32 : i32
    %1 = arith.extui %0 : i1 to i32
    %c0_i32_0 = arith.constant 0 : i32
    %2 = arith.cmpi ne, %1, %c0_i32_0 : i32
    scf.if %2 {
      %cst_30 = arith.constant 0xFF800000 : f32
      %50 = vector.broadcast %cst_30 : f32 to vector<1x64xf32>
      %c0_31 = arith.constant 0 : index
      %c0_32 = arith.constant 0 : index
      %51 = vector.load %arg6[%c0_31, %c0_32] : memref<1x64xf32, #tpu.memory_space<vmem>>, vector<1x64xf32>
      tpu.vector_store %arg6[%c0_31, %c0_32], %50 {strides = array<i32>} : memref<1x64xf32, #tpu.memory_space<vmem>>, vector<1x64xf32>,
    } else {
    }
    %c16_i32 = arith.constant 16 : i32
    %3 = arith.muli %arg1, %c16_i32 : i32
    %4 = tpu.assume_multiple %3, 8 : i32
    %c0 = arith.constant 0 : index
    %5 = arith.index_cast %4 : i32 to index
    %c0_1 = arith.constant 0 : index
    %6 = vector.load %arg2[%c0, %5, %c0_1] : memref<1x24x3xf32, #tpu.memory_space<vmem>>, vector<1x24x3xf32>
    %7 = vector.shape_cast %6 : vector<1x24x3xf32> to vector<24x3xf32>
    %8 = vector.extract_strided_slice %7 {offsets = [0, 0], sizes = [16, 3], strides = [1, 1]} : vector<24x3xf32> to vector<16x3xf32>
    %c0_2 = arith.constant 0 : index
    %c0_3 = arith.constant 0 : index
    %c0_4 = arith.constant 0 : index
    %9 = vector.load %arg3[%c0_2, %c0_3, %c0_4] : memref<7x3x64xf32, #tpu.memory_space<vmem>>, vector<1x3x64xf32>
    %10 = vector.shape_cast %9 : vector<1x3x64xf32> to vector<3x64xf32>
    %cst = arith.constant dense<0.000000e+00> : vector<16x64xf32>
    %11 = tpu.matmul %8, %10, %cst {dimension_numbers = #tpu.dot_dimension_numbers<[1], [0], [0], [1], [0, 0, 1, 1], [], []>} : vector<16x3xf32>, vector<3x64xf32>, vector<16x64xf32> -> vector<16x64xf32>
    %12 = vector.extract_strided_slice %7 {offsets = [1, 0], sizes = [16, 3], strides = [1, 1]} : vector<24x3xf32> to vector<16x3xf32>
    %c1 = arith.constant 1 : index
    %c0_5 = arith.constant 0 : index
    %c0_6 = arith.constant 0 : index
    %13 = vector.load %arg3[%c1, %c0_5, %c0_6] : memref<7x3x64xf32, #tpu.memory_space<vmem>>, vector<1x3x64xf32>
    %14 = vector.shape_cast %13 : vector<1x3x64xf32> to vector<3x64xf32>
    %cst_7 = arith.constant dense<0.000000e+00> : vector<16x64xf32>
    %15 = tpu.matmul %12, %14, %cst_7 {dimension_numbers = #tpu.dot_dimension_numbers<[1], [0], [0], [1], [0, 0, 1, 1], [], []>} : vector<16x3xf32>, vector<3x64xf32>, vector<16x64xf32> -> vector<16x64xf32>
    %16 = arith.addf %11, %15 : vector<16x64xf32>
    %17 = vector.extract_strided_slice %7 {offsets = [2, 0], sizes = [16, 3], strides = [1, 1]} : vector<24x3xf32> to vector<16x3xf32>
    %c2 = arith.constant 2 : index
    %c0_8 = arith.constant 0 : index
    %c0_9 = arith.constant 0 : index
    %18 = vector.load %arg3[%c2, %c0_8, %c0_9] : memref<7x3x64xf32, #tpu.memory_space<vmem>>, vector<1x3x64xf32>
    %19 = vector.shape_cast %18 : vector<1x3x64xf32> to vector<3x64xf32>
    %cst_10 = arith.constant dense<0.000000e+00> : vector<16x64xf32>
    %20 = tpu.matmul %17, %19, %cst_10 {dimension_numbers = #tpu.dot_dimension_numbers<[1], [0], [0], [1], [0, 0, 1, 1], [], []>} : vector<16x3xf32>, vector<3x64xf32>, vector<16x64xf32> -> vector<16x64xf32>
    %21 = arith.addf %16, %20 : vector<16x64xf32>
    %22 = vector.extract_strided_slice %7 {offsets = [3, 0], sizes = [16, 3], strides = [1, 1]} : vector<24x3xf32> to vector<16x3xf32>
    %c3 = arith.constant 3 : index
    %c0_11 = arith.constant 0 : index
    %c0_12 = arith.constant 0 : index
    %23 = vector.load %arg3[%c3, %c0_11, %c0_12] : memref<7x3x64xf32, #tpu.memory_space<vmem>>, vector<1x3x64xf32>
    %24 = vector.shape_cast %23 : vector<1x3x64xf32> to vector<3x64xf32>
    %cst_13 = arith.constant dense<0.000000e+00> : vector<16x64xf32>
    %25 = tpu.matmul %22, %24, %cst_13 {dimension_numbers = #tpu.dot_dimension_numbers<[1], [0], [0], [1], [0, 0, 1, 1], [], []>} : vector<16x3xf32>, vector<3x64xf32>, vector<16x64xf32> -> vector<16x64xf32>
    %26 = arith.addf %21, %25 : vector<16x64xf32>
    %27 = vector.extract_strided_slice %7 {offsets = [4, 0], sizes = [16, 3], strides = [1, 1]} : vector<24x3xf32> to vector<16x3xf32>
    %c4 = arith.constant 4 : index
    %c0_14 = arith.constant 0 : index
    %c0_15 = arith.constant 0 : index
    %28 = vector.load %arg3[%c4, %c0_14, %c0_15] : memref<7x3x64xf32, #tpu.memory_space<vmem>>, vector<1x3x64xf32>
    %29 = vector.shape_cast %28 : vector<1x3x64xf32> to vector<3x64xf32>
    %cst_16 = arith.constant dense<0.000000e+00> : vector<16x64xf32>
    %30 = tpu.matmul %27, %29, %cst_16 {dimension_numbers = #tpu.dot_dimension_numbers<[1], [0], [0], [1], [0, 0, 1, 1], [], []>} : vector<16x3xf32>, vector<3x64xf32>, vector<16x64xf32> -> vector<16x64xf32>
    %31 = arith.addf %26, %30 : vector<16x64xf32>
    %32 = vector.extract_strided_slice %7 {offsets = [5, 0], sizes = [16, 3], strides = [1, 1]} : vector<24x3xf32> to vector<16x3xf32>
    %c5 = arith.constant 5 : index
    %c0_17 = arith.constant 0 : index
    %c0_18 = arith.constant 0 : index
    %33 = vector.load %arg3[%c5, %c0_17, %c0_18] : memref<7x3x64xf32, #tpu.memory_space<vmem>>, vector<1x3x64xf32>
    %34 = vector.shape_cast %33 : vector<1x3x64xf32> to vector<3x64xf32>
    %cst_19 = arith.constant dense<0.000000e+00> : vector<16x64xf32>
    %35 = tpu.matmul %32, %34, %cst_19 {dimension_numbers = #tpu.dot_dimension_numbers<[1], [0], [0], [1], [0, 0, 1, 1], [], []>} : vector<16x3xf32>, vector<3x64xf32>, vector<16x64xf32> -> vector<16x64xf32>
    %36 = arith.addf %31, %35 : vector<16x64xf32>
    %37 = vector.extract_strided_slice %7 {offsets = [6, 0], sizes = [16, 3], strides = [1, 1]} : vector<24x3xf32> to vector<16x3xf32>
    %c6 = arith.constant 6 : index
    %c0_20 = arith.constant 0 : index
    %c0_21 = arith.constant 0 : index
    %38 = vector.load %arg3[%c6, %c0_20, %c0_21] : memref<7x3x64xf32, #tpu.memory_space<vmem>>, vector<1x3x64xf32>
    %39 = vector.shape_cast %38 : vector<1x3x64xf32> to vector<3x64xf32>
    %cst_22 = arith.constant dense<0.000000e+00> : vector<16x64xf32>
    %40 = tpu.matmul %37, %39, %cst_22 {dimension_numbers = #tpu.dot_dimension_numbers<[1], [0], [0], [1], [0, 0, 1, 1], [], []>} : vector<16x3xf32>, vector<3x64xf32>, vector<16x64xf32> -> vector<16x64xf32>
    %41 = arith.addf %36, %40 : vector<16x64xf32>
    %c0_23 = arith.constant 0 : index
    %c0_24 = arith.constant 0 : index
    %42 = vector.load %arg6[%c0_23, %c0_24] : memref<1x64xf32, #tpu.memory_space<vmem>>, vector<1x64xf32>
    %cst_25 = arith.constant dense<0xFF800000> : vector<64xf32>
    %43 = vector.multi_reduction <maximumf>, %41, %cst_25 [0] : vector<16x64xf32> to vector<64xf32>
    %44 = vector.shape_cast %43 : vector<64xf32> to vector<1x64xf32>
    %45 = arith.maximumf %42, %44 : vector<1x64xf32>
    %c0_26 = arith.constant 0 : index
    %c0_27 = arith.constant 0 : index
    %46 = vector.load %arg6[%c0_26, %c0_27] : memref<1x64xf32, #tpu.memory_space<vmem>>, vector<1x64xf32>
    tpu.vector_store %arg6[%c0_26, %c0_27], %45 {strides = array<i32>} : memref<1x64xf32, #tpu.memory_space<vmem>>, vector<1x64xf32>,
    %c0_i32_28 = arith.constant 0 : i32
    %47 = arith.cmpi eq, %arg1, %c0_i32_28 : i32
    %48 = arith.extui %47 : i1 to i32
    %c0_i32_29 = arith.constant 0 : i32
    %49 = arith.cmpi ne, %48, %c0_i32_29 : i32
    scf.if %49 {
      %c0_30 = arith.constant 0 : index
      %c0_31 = arith.constant 0 : index
      %50 = vector.load %arg6[%c0_30, %c0_31] : memref<1x64xf32, #tpu.memory_space<vmem>>, vector<1x64xf32>
      %c0_32 = arith.constant 0 : index
      %c0_33 = arith.constant 0 : index
      %51 = memref.load %arg4[%c0_32, %c0_33] : memref<1x1xf32, #tpu.memory_space<smem>>
      %52 = vector.broadcast %51 : f32 to vector<1x64xf32>
      %53 = arith.addf %50, %52 : vector<1x64xf32>
      %c0_34 = arith.constant 0 : index
      %c0_35 = arith.constant 0 : index
      %c0_36 = arith.constant 0 : index
      %54 = vector.load %arg5[%c0_34, %c0_35, %c0_36] : memref<1x1x64xf32, #tpu.memory_space<vmem>>, vector<1x1x64xf32>
      %55 = vector.shape_cast %54 : vector<1x1x64xf32> to vector<1x64xf32>
      %56 = vector.shape_cast %53 : vector<1x64xf32> to vector<1x1x64xf32>
      tpu.vector_store %arg5[%c0_34, %c0_35, %c0_36], %56 {strides = array<i32>} : memref<1x1x64xf32, #tpu.memory_space<vmem>>, vector<1x1x64xf32>,
    } else {
    }
    return
  }
  func.func @transform_0(%arg0: i32, %arg1: i32) -> (i32, i32, i32) {
    %c0_i32 = arith.constant 0 : i32
    %c0_i32_0 = arith.constant 0 : i32
    %c0_i32_1 = arith.constant 0 : i32
    return %arg0, %c0_i32, %c0_i32_0 : i32, i32, i32
  }
  func.func @transform_1(%arg0: i32, %arg1: i32) -> (i32, i32, i32) {
    %c0_i32 = arith.constant 0 : i32
    %c0_i32_0 = arith.constant 0 : i32
    %c0_i32_1 = arith.constant 0 : i32
    %c0_i32_2 = arith.constant 0 : i32
    return %c0_i32, %c0_i32_0, %c0_i32_1 : i32, i32, i32
  }
  func.func @transform_2(%arg0: i32, %arg1: i32) -> (i32, i32) {
    %c0_i32 = arith.constant 0 : i32
    %c0_i32_0 = arith.constant 0 : i32
    %c0_i32_1 = arith.constant 0 : i32
    return %c0_i32, %c0_i32_0 : i32, i32
  }
  func.func @transform_3(%arg0: i32, %arg1: i32) -> (i32, i32, i32) {
    %c0_i32 = arith.constant 0 : i32
    %c0_i32_0 = arith.constant 0 : i32
    %c0_i32_1 = arith.constant 0 : i32
    return %arg0, %c0_i32, %c0_i32_0 : i32, i32, i32
  }
}

</mosaic_0001>

<bundles_post_ra>
// kernel: audionet_forward.1
= control target key start
LH: loop header
LB: loop body
LE: loop exit
PB: predicated region body
PF: predicated region fallthrough
CT: control target
= control target key end

     0   :  { %s913_s0 = inlined_call_operand.vmem [shape: f32[2,24,3], index: 0, kind: input, shape index: {}]   ;;  %s914_s1 = inlined_call_operand.vmem [shape: f32[7,3,64], index: 1, kind: input, shape index: {}]   ;;  %s915_s2 = inlined_call_operand.<no memory space> [shape: f32[1,1], index: 2, kind: input, shape index: {}]   ;;  %s916_s3 = inlined_call_operand.hbm [shape: f32[2,1,64], index: 3, kind: output, shape index: {}]  }
   0x1   :  { %8 = sst [smem:[#allocation3]] %s915_s2 }
   0x2   :  { %9 = vsyncpa [#allocation5], 0 }
   0x3   :  { %11 = vsyncpa [#allocation5 + $0x1], 0  ;;  %s762_s14 = smov 0   ;;  %s764_s15 = smov 0  }
   0x4   :  { %s766_s16 = smov 0   ;;  %s768_s17 = smov 0  }
   0x5   :  { %s770_s18 = smov 0   ;;  %s772_s19 = smov 0  }
   0x6 LB: > { %s565_s2 = sadd.s32 4294967295, %s736_s19   ;;  %s566_s20 = sadd.s32 4294967294, %s736_s19   ;;  %s736_s19 = sphi %s772_s19, %s17_s19   ;;  %s732_s18 = sphi %s770_s18, %s923_s18   ;;  %s728_s17 = sphi %s768_s17, %s922_s17   ;;  %s724_s16 = sphi %s766_s16, %s921_s16   ;;  %s720_s15 = sphi %s764_s15, %s920_s15   ;;  %s716_s14 = sphi %s762_s14, %s919_s14  }
   0x7   : > { %s29_s21 = sadd.s32 1, %s732_s18  ;;  %s104_s22 = sadd.s32 1, %s724_s16 }
   0x8   : > { %p31_p0 = scmp.ge.s32.totalorder %s29_s21, 2  ;;  %p114_p1 = scmp.ne.s32.totalorder %s724_s16, %s720_s15 }
   0x9   : > { %p115_p2 = scmp.eq.s32.totalorder %s565_s2, 1  ;;  %p120_p3 = scmp.ne.s32.totalorder %s720_s15, %s716_s14 }
   0xa   : > { %s925_s21 = smov (%p31_p0, %s29_s21), 0  ;;  %p121_p5 = scmp.eq.s32.totalorder %s566_s20, 1 }
   0xb   : > { %p802_p4 = por %p115_p2, %p114_p1  ;;  %s101_s24 = ssub.s32 %s732_s18, %s925_s21 }
   0xc   : > { %p569_p6 = scmp.ge.s32.totalorder %s736_s19, 1  ;;  %p102_p7 = scmp.eq.s32.totalorder %s101_s24, 0 }
   0xd   : > { %p809_p8 = por %p121_p5, %p120_p3  ;;  %p153_p9 = scmp.lt.s32.totalorder %s736_s19, 3 }
   0xe   : > { %s815_s26 = scalar_select %p102_p7, %s724_s16, %s104_s22  }
   0xf   : > { %p154_p10 = pnand %p569_p6, %p153_p9 }
  0x10   : > { %p176_p11 = scmp.lt.s32.totalorder (!%p154_p10), %s728_s17, 1  ;;  %s483_s28 = sld [smem:[#allocation3]] (!%p154_p10) }
  0x11   : > { %157 = sbr.rel (%p154_p10) target bundleno = 219 (0xdb), region = 32  ;;  %s174_s29 = sand.u32 (!%p154_p10), 1, %s720_s15  }
  0x12   : > { %s496_s5 = scalar_lea.hbm (!%p154_p10), %s916_s3, %s728_s17  ;;  %s488_s9 = scalar_lea.sflag (!%p154_p10), [#allocation5], %s174_s29 }
  0x13   : > { %s500_s8 = sshll.u32 (!%p154_p10), %s496_s5, 4  ;;  %s678_s13 = scalar_lea.hbm (!%p154_p10), %s916_s3, 2  ;;  %s501_s8 = int_to_ptr.hbm [resolvable:$true] %s500_s8 }
  0x14   : > { %s672_s10 = sshra.s32 (!%p154_p10), %s501_s8, 4  ;;  %s673_s10 = int_to_ptr.hbm [resolvable:$true] %s672_s10 }
  0x15   : > { %s674_s11 = scalar_lea.hbm (!%p154_p10), %s673_s10, 1  ;;  %p679_p1 = scmp.lt.s32.totalorder (!%p154_p10), %s673_s10, %s916_s3 }
  0x16   : > { %v571_v0 = vld [vmem:[%s914_s1 + $0x4] sm:$0x7]  ;;  %vm209_vm0 = vcmask 1042432   ;;  %v192_v1 = vld [vmem:[%s914_s1] sm:$0x7]  ;;  %s177_s6 = scalar_select %p176_p11, %s728_s17, 1 }
  0x17   : > { %600 = vmatpush.msk.msra.mxu3 %vm209_vm0, %v571_v0  ;;  %575 = vmatpush.msk.msra.mxu1 %vm209_vm0, %v192_v1  ;;  %v578_v2 = vld [vmem:[%s914_s1 + $0x8] sm:$0x7]  ;;  %v594_v3 = vld [vmem:[%s914_s1 + $0x18] sm:$0x7]  ;;  %v582_v4 = vld [vmem:[%s914_s1 + $0xc] sm:$0x7]  ;;  %p675_p12 = scmp.ne.s32.totalorder %s673_s10, %s674_s11  ;;  %p680_p2 = scmp.lt.s32.totalorder %s678_s13, %s674_s11 }
  0x18   : > { %579 = vmatpush.msk.msra.mxu2 %vm209_vm0, %v578_v2  ;;  %572 = vmatpush.msk.msra.mxu0 %vm209_vm0, %v571_v0  ;;  %v590_v5 = vld [vmem:[%s914_s1 + $0x14] sm:$0x7]  ;;  %v586_v6 = vld [vmem:[%s914_s1 + $0x10] sm:$0x7]  ;;  %s601_s20 = smul.u32 24, %s177_s6  ;;  %vm204_vm1 = vcmask 23552  }
  0x19   : > { %583 = vmatpush.msk.msrb.mxu3 %vm209_vm0, %v582_v4  ;;  %591 = vmatpush.msk.msrb.mxu1 %vm209_vm0, %v590_v5  ;;  %vm198_vm2 = vcmask 1046528   ;;  %vm268_vm3 = vcmask 1045504   ;;  %vm308_vm4 = vcmask 1044480   ;;  %vm348_vm5 = vcmask 1043456   ;;  %s175_s6 = scalar_lea.vmem [#allocation4], %s174_s29  ;;  %p676_p13 = pnand %p675_p12, %p802_p4 }
  0x1a   : > { %595 = vmatpush.msk.msrb.mxu2 %vm209_vm0, %v594_v3  ;;  %587 = vmatpush.msk.msrb.mxu0 %vm209_vm0, %v586_v6  ;;  %s180_s27 = scalar_lea.vmem %s913_s0, %s601_s20  ;;  %vm427_vm6 = vcmask 1041408   ;;  %vm185_vm7 = vcmask 516096   ;;  %v738_v45 = vmov -inf   ;;  %vm466_vm8 = vcmask 523264   ;;  %s498_s7 = sshll.u32 %s175_s6, 4  ;;  %s499_s7 = int_to_ptr.vmem [resolvable:$true] %s498_s7 }
  0x1b   : > { %v190_v7 = vld [vmem:[%s180_s27 + $0x8] sm:$0xff]  ;;  %v191_v8 = vld [vmem:[%s180_s27 + $0x10] sm:$0xff]  ;;  %v189_v9 = vld [vmem:[%s180_s27] sm:$0xff]  ;;  %186 = vst.msk [vmem:[#allocation2] sm:$0x1] %vm185_vm7, %v738_v45  ;;  %p677_p0 = pneg %p676_p13  ;;  %p681_p3 = por %p680_p2, %p679_p1 }
  0x1c   : > { %v200_v10 = vrot.slane %v190_v7, 1  ;;  %v202_v11 = vrot.slane %v191_v8, 1  ;;  %576 = vmatmul.msk.f32.vlgmr.msra.gmra.mxu1 %vm204_vm1, %v189_v9  ;;  %v269_v12 = vrot.slane %v189_v9, 2  ;;  %v270_v13 = vrot.slane %v190_v7, 2 }
  0x1d   : > { %v199_v14 = vrot.slane %v189_v9, 1  ;;  %v272_v18 = vrot.slane %v191_v8, 2  ;;  %v309_v19 = vrot.slane %v189_v9, 3  ;;  %v310_v20 = vrot.slane %v190_v7, 3  ;;  %p682_p5 = pnand %p681_p3, %p677_p0 }
  0x1e   : > { %v203_v15 = vsel %vm198_vm2, %v200_v10, %v202_v11  ;;  %v271_v16 = vsel %vm268_vm3, %v269_v12, %v270_v13  ;;  %v349_v21 = vrot.slane %v189_v9, 4  ;;  %v350_v22 = vrot.slane %v190_v7, 4 }
  0x1f   : > { %574 = vmatmul.msk.f32.vlgmr.msra.gmra.mxu3 %vm204_vm1, %v203_v15  ;;  %580 = vmatmul.msk.f32.vlgmr.msra.gmra.mxu2 %vm204_vm1, %v271_v16  ;;  %v201_v17 = vsel %vm198_vm2, %v199_v14, %v200_v10  ;;  %v273_v23 = vsel %vm268_vm3, %v270_v13, %v272_v18  ;;  %v311_v24 = vsel %vm308_vm4, %v309_v19, %v310_v20  ;;  %v388_v26 = vrot.slane %v189_v9, 5 }
  0x20   : > { %573 = vmatmul.msk.f32.vlgmr.msra.gmra.mxu0 %vm204_vm1, %v201_v17  ;;  %v351_v25 = vsel %vm348_vm5, %v349_v21, %v350_v22  ;;  %v389_v27 = vrot.slane %v190_v7, 5  ;;  %v312_v28 = vrot.slane %v191_v8, 3  ;;  %v428_v29 = vrot.slane %v189_v9, 6 }
  0x21   : > { %v429_v30 = vrot.slane %v190_v7, 6  ;;  %v352_v32 = vrot.slane %v191_v8, 4  ;;  %v391_v36 = vrot.slane %v191_v8, 5  ;;  %v431_v37 = vrot.slane %v191_v8, 6 }
  0x22   : > { %v390_v31 = vsel %vm209_vm0, %v388_v26, %v389_v27  ;;  %v313_v33 = vsel %vm308_vm4, %v310_v20, %v312_v28  ;;  %v465_v11 = vld [vmem:[#allocation2] sm:$0x1]  ;;  %v484_v14 = vstv %s483_s28 }
  0x23   : > { %v430_v34 = vsel %vm427_vm6, %v428_v29, %v429_v30  ;;  %v353_v35 = vsel %vm348_vm5, %v350_v22, %v352_v32  ;;  %v392_v38 = vsel %vm209_vm0, %v389_v27, %v391_v36  ;;  %v432_v39 = vsel %vm427_vm6, %v429_v30, %v431_v37 }
  0x24   : > { %577 = vmatmul.msk.f32.gmra.mxu1 %vm204_vm1, %v190_v7 }
  0x27   : > { %581 = vmatmul.msk.f32.gmra.mxu2 %vm204_vm1, %v273_v23  ;;  %584 = vmatmul.msk.f32.vlgmr.msrb.gmra.mxu3 %vm204_vm1, %v311_v24 }
  0x28   : > { %588 = vmatmul.msk.f32.vlgmr.msrb.gmra.mxu0 %vm204_vm1, %v351_v25 }
  0x2c   : > { %592 = vmatmul.msk.f32.vlgmr.msrb.gmra.mxu1 %vm204_vm1, %v390_v31 }
  0x2f   : > { %585 = vmatmul.msk.f32.gmra.mxu3 %vm204_vm1, %v313_v33  ;;  %596 = vmatmul.msk.f32.vlgmr.msrb.gmra.mxu2 %vm204_vm1, %v430_v34 }
  0x30   : > { %589 = vmatmul.msk.f32.gmra.mxu0 %vm204_vm1, %v353_v35 }
  0x34   : > { %593 = vmatmul.msk.f32.gmra.mxu1 %vm204_vm1, %v392_v38 }
  0x37   : > { %597 = vmatmul.msk.f32.gmra.mxu2 %vm204_vm1, %v432_v39 }
  0x99   : > { %v260_v40 = vpop.f32.mrf.mxu1 }
  0x9d   : > { %v230_v41 = vpop.f32.mrf.mxu0 }
  0x9e   : > { %v261_v47 = vadd.f32 %v260_v40, %v230_v41 }
  0xa1   : > { %v263_v44 = vpop.f32.mrf.mxu1 }
  0xa2   : > { %v233_v42 = vpop.f32.mrf.mxu3  ;;  %v298_v43 = vpop.f32.mrf.mxu2 }
  0xa3   : > { %v304_v51 = vadd.f32 %v298_v43, %v261_v47  ;;  %v264_v52 = vadd.f32 %v263_v44, %v233_v42 }
  0xa5   : > { %v378_v46 = vpop.f32.mrf.mxu0 }
  0xa9   : > { %v417_v50 = vpop.f32.mrf.mxu1 }
  0xaa   : > { %v301_v48 = vpop.f32.mrf.mxu2  ;;  %v338_v49 = vpop.f32.mrf.mxu3 }
  0xab   : > { %v344_v53 = vadd.f32 %v338_v49, %v304_v51  ;;  %v305_v54 = vadd.f32 %v301_v48, %v264_v52 }
  0xad   : > { %v381_v55 = vpop.f32.mrf.mxu0  ;;  %v384_v58 = vadd.f32 %v378_v46, %v344_v53 }
  0xaf   : > { %v423_v62 = vadd.f32 %v417_v50, %v384_v58 }
  0xb1   : > { %v420_v61 = vpop.f32.mrf.mxu1 }
  0xb2   : > { %v341_v56 = vpop.f32.mrf.mxu3  ;;  %v457_v57 = vpop.f32.mrf.mxu2 }
  0xb3   : > { %v345_v59 = vadd.f32 %v341_v56, %v305_v54  ;;  %v463_v63 = vadd.f32 %v457_v57, %v423_v62 }
  0xb5   : > { %v385_v60 = vadd.f32 %v381_v55, %v345_v59  ;;  %v467_v3 = vsel %vm466_vm8, %v463_v63, -inf }
  0xb7   : > { %v424_v0 = vadd.f32 %v420_v61, %v385_v60 }
  0xba   : > { %v460_v1 = vpop.f32.mrf.mxu2 }
  0xbb   : > { %v464_v2 = vadd.f32 %v460_v1, %v424_v0 }
  0xbd   : > { %v468_v4 = vsel %vm466_vm8, %v464_v2, -inf }
  0xbe   : > { %v469_v5 = vmax.f32 %v467_v3, %v468_v4 }
  0xc0   : > { %v470_v6 = vrot.slane %v469_v5, 4 }
  0xc2   : > { %v471_v7 = vmax.f32 %v469_v5, %v470_v6 }
  0xc4   : > { %v472_v8 = vrot.slane %v471_v7, 2 }
  0xc6   : > { %v473_v9 = vmax.f32 %v471_v7, %v472_v8 }
  0xc8   : > { %v474_v10 = vrot.slane %v473_v9, 1 }
  0xca   : > { %v475_v12 = vmax.f32 %v473_v9, %v474_v10 }
  0xcc   : > { %v476_v13 = vmax.f32 %v465_v11, %v475_v12 }
  0xce   : > { %478 = vst.msk [vmem:[#allocation2] sm:$0x1] %vm185_vm7, %v476_v13 }
  0xd5   : > { %v482_v15 = vld [vmem:[#allocation2] sm:$0x1] }
  0xd6   : > { %v485_v16 = vadd.f32 %v484_v14, %v482_v15 }
  0xd8   : > { %486 = vst.msk [vmem:[%s175_s6] sm:$0x1] %vm185_vm7, %v485_v16 }
  0xd9   : > { %685 = shalt.err (!%p682_p5)
}
  0xda   : > { %602 = dma.vmem_to_hbm [thread:$0]  (%p802_p4), %s499_s7, 16, %s501_s8, %s488_s9  }
  0xdb PF: > { %p608_p6 = scmp.ge.s32.totalorder %s736_s19, 2  ;;  %s512_s22 = sand.u32 1, %s716_s14  }
  0xdc   : > { %s513_s24 = scalar_lea.sflag [#allocation5], %s512_s22 }
  0xdd   : > { %p605_p7 = pnand %p608_p6, %p809_p8 }
  0xdf   : > { %p606_p9 = pneg %p605_p7 }
  0xe1   : > { %711 = dma.done.wait (%p606_p9), %s513_s24, 16  }
  0xe2   : > { %713 = vsyncadd (%p606_p9), %s513_s24, 4294967280  ;;  %s17_s19 = sadd.s32 1, %s736_s19   ;;  %s919_s14 = smov %s720_s15 }
  0xe3   : > { %p14_p10 = scmp.ge.s32.totalorder %s17_s19, 4   ;;  %s920_s15 = smov %s724_s16 }
  0xe4   : > { %s921_s16 = smov %s815_s26  ;;  %s922_s17 = smov %s732_s18 }
  0xe5   : > { %s923_s18 = smov %s925_s21  ;;  %16 = sbr.rel (!%p14_p10) target bundleno = 6 (0x6), region = 82 }
  0xea   :  { %518 = vsyncpa [#allocation5], 1 }
  0xeb   :  { %520 = vsyncpa [#allocation5 + $0x1], 1 }

</bundles_post_ra>
